<compile_context>
chip_gen: v7x
topology: tpu7x:2x2x1
jax: 0.10.0
libtpu: 0.0.40
codegen_flags: <defaults>
</compile_context>

<pallas_src>
import functools

import jax
import jax.numpy as jnp
from jax.experimental import pallas as pl
from jax.experimental.pallas import tpu as pltpu


_IN_BUDGET = 16 * 1024 * 1024  # bytes for double-buffered inputs + temporaries


def _round_down(x, m):
    return (x // m) * m


# -----------------------------------------------------------------------------
# Kernel A: sublane-dense layout, inputs (N, C, HW/128, 128), block (C, TS, 128)
# -----------------------------------------------------------------------------
def _make_sublane_kernel(C, TS, HWB, NI, need_mask):
    def kernel(s_ref, w_ref, out_ref):
        i = pl.program_id(2)

        @pl.when(i == 0)
        def _():
            out_ref[...] = jnp.zeros_like(out_ref)

        # Pass 1: running channel maxes + "value at first argmax of the other
        # head".  Strict '>' keeps the first index on ties (torch.max semantics).
        s0 = s_ref[0].astype(jnp.float32)          # (TS, 128)
        w0 = w_ref[0].astype(jnp.float32)
        smax, wmax = s0, w0
        sel_s, sel_w = s0, w0                       # s @ argmax(w), w @ argmax(s)
        for c in range(1, C):
            sc = s_ref[c].astype(jnp.float32)
            wc = w_ref[c].astype(jnp.float32)
            take_w = wc > wmax
            take_s = sc > smax
            sel_s = jnp.where(take_w, sc, sel_s)
            sel_w = jnp.where(take_s, wc, sel_w)
            wmax = jnp.where(take_w, wc, wmax)
            smax = jnp.where(take_s, sc, smax)

        # Pass 2: stable logsumexp sums (exp runs on the EUP slot).
        acc_s = jnp.zeros((TS, 128), jnp.float32)
        acc_w = jnp.zeros((TS, 128), jnp.float32)
        for c in range(C):
            acc_s = acc_s + jnp.exp(s_ref[c].astype(jnp.float32) - smax)
            acc_w = acc_w + jnp.exp(w_ref[c].astype(jnp.float32) - wmax)

        per = (smax + jnp.log(acc_s) - sel_s) + (wmax + jnp.log(acc_w) - sel_w)

        if need_mask:
            # Partial last pixel-row block: mask with a hardware select (not a
            # multiply) so Inf/NaN in garbage rows cannot propagate.
            j = pl.program_id(1)
            row = jax.lax.broadcasted_iota(jnp.int32, (TS, 128), 0)
            per = jnp.where((j * NI + i) * TS + row < HWB, per, 0.0)

        out_ref[...] += per

    return kernel


# -----------------------------------------------------------------------------
# Kernel B: lane layout, inputs (N, C, HW), block (C, TP)
# -----------------------------------------------------------------------------
def _make_lane_kernel(C, TP, HW, NI, need_mask):
    def kernel(s_ref, w_ref, out_ref):
        i = pl.program_id(2)

        @pl.when(i == 0)
        def _():
            out_ref[...] = jnp.zeros_like(out_ref)

        # Cast after load: HBM traffic stays in the input dtype, math in f32.
        s = s_ref[...].astype(jnp.float32)  # (C, TP)
        w = w_ref[...].astype(jnp.float32)

        c_iota = jax.lax.broadcasted_iota(jnp.int32, (C, TP), 0)
        smax = jnp.max(s, axis=0, keepdims=True)    # shared by argmax + lse
        wmax = jnp.max(w, axis=0, keepdims=True)

        def ce(logits, logits_max, labels, labels_max):
            # first-index argmax over channels (torch.max index semantics)
            idx = jnp.min(jnp.where(labels == labels_max, c_iota, C),
                          axis=0, keepdims=True)                       # (1, TP)
            onehot = (c_iota == idx).astype(logits.dtype)               # (C, TP)
            sel = jnp.sum(onehot * logits, axis=0, keepdims=True)       # (1, TP)
            lse = logits_max + jnp.log(
                jnp.sum(jnp.exp(logits - logits_max), axis=0, keepdims=True))
            return lse - sel

        per = ce(s, smax, w, wmax) + ce(w, wmax, s, smax)

        if need_mask:
            j = pl.program_id(1)
            lane = jax.lax.broadcasted_iota(jnp.int32, (1, TP), 1)
            per = jnp.where((j * NI + i) * TP + lane < HW, per, 0.0)

        out_ref[...] += per

    return kernel


@functools.partial(jax.jit, static_argnames=("loss_weight",))
def semi_loss_cps(strong_logits, weak_logits, loss_weight=1.0):
    """strong_logits, weak_logits: (N, C, H, W) -> scalar loss (float32)."""
    assert strong_logits.shape == weak_logits.shape
    N, C, H, W = strong_logits.shape
    assert C <= 255, "ignore_index=255 must remain a no-op for argmax pseudo-labels"
    HW = H * W
    itemsize = jnp.dtype(strong_logits.dtype).itemsize

    use_sublane = (HW % 128 == 0) and (C <= 64)
    sems = ("parallel", "parallel", "arbitrary")

    if use_sublane:
        HWB = HW // 128
        # Per pixel-row (128 lanes): 2 inputs x 2 pipeline buffers of C channels
        # (input dtype) + ~12 f32 temporary rows (maxes, selections, exp accums).
        per_row = 2 * 2 * C * 128 * itemsize + 12 * 128 * 4
        ts_cap = min(512, max(8, _round_down(_IN_BUDGET // per_row, 8)))
        TS = HWB if HWB <= ts_cap else ts_cap
        num_blocks = pl.cdiv(HWB, TS)
        need_mask = (HWB % TS) != 0
        NO = 2 if num_blocks % 2 == 0 else 1      # 2nd parallel axis (v7x megacore)
        NI = num_blocks // NO

        # Free reshape: NCHW is contiguous as (N, C, HW/128, 128).
        s4 = strong_logits.reshape(N, C, HWB, 128)
        w4 = weak_logits.reshape(N, C, HWB, 128)

        est = (2 * 2 * C * TS * 128 * itemsize     # double-buffered inputs
               + 2 * TS * 128 * 4                  # output buffers
               + 12 * TS * 128 * 4)                # f32 temporaries
        vmem_limit = int(min(60 << 20, max(32 << 20, est + (16 << 20))))

        kernel = _make_sublane_kernel(C, TS, HWB, NI, need_mask)
        partial = pl.pallas_call(
            kernel,
            out_shape=jax.ShapeDtypeStruct((N * NO, TS, 128), jnp.float32),
            grid_spec=pltpu.PrefetchScalarGridSpec(
                num_scalar_prefetch=0,
                grid=(N, NO, NI),
                in_specs=[
                    pl.BlockSpec((None, C, TS, 128),
                                 lambda n, j, i: (n, 0, j * NI + i, 0)),
                    pl.BlockSpec((None, C, TS, 128),
                                 lambda n, j, i: (n, 0, j * NI + i, 0)),
                ],
                out_specs=pl.BlockSpec((None, TS, 128),
                                       lambda n, j, i: (n * NO + j, 0, 0)),
            ),
            compiler_params=pltpu.CompilerParams(
                dimension_semantics=sems, vmem_limit_bytes=vmem_limit),
        )(s4, w4)
    else:
        # Free reshape: NCHW is contiguous as (N, C, H*W).
        s3 = strong_logits.reshape(N, C, HW)
        w3 = weak_logits.reshape(N, C, HW)
        HW_arr = HW
        if HW < 128:
            # Tiny-image corner case only: lane tiles must be multiples of 128,
            # so pad this handful of elements (negligible copy).  Larger ragged
            # images are handled with a partial last block + in-kernel mask.
            s3 = jnp.pad(s3, ((0, 0), (0, 0), (0, 128 - HW)))
            w3 = jnp.pad(w3, ((0, 0), (0, 0), (0, 128 - HW)))
            HW_arr = 128

        sub_in = max(8, 32 // itemsize)              # sublane tile of input dtype
        c_pad_in = pl.cdiv(C, sub_in) * sub_in       # layout-padded C (input dtype)
        c_pad32 = pl.cdiv(C, 8) * 8                  # layout-padded C (f32 temps)
        per_lane = (2 * 2 * c_pad_in * itemsize      # 2 inputs x 2 buffers
                    + 6 * c_pad32 * 4                # f32 casts / onehot / exp temps
                    + 16 * 4)                        # per-lane rows (max/lse/sel/...)
        tp_cap = max(128, _round_down(_IN_BUDGET // per_lane, 128))
        TP = max(128, min(8192, tp_cap, _round_down(HW_arr, 128)))
        num_blocks = pl.cdiv(HW_arr, TP)
        need_mask = (HW % TP) != 0
        NO = 2 if num_blocks % 2 == 0 else 1
        NI = num_blocks // NO

        est = (2 * 2 * c_pad_in * TP * itemsize + 2 * TP * 4
               + 6 * c_pad32 * TP * 4)
        vmem_limit = int(min(60 << 20, max(32 << 20, est + (16 << 20))))

        kernel = _make_lane_kernel(C, TP, HW, NI, need_mask)
        partial = pl.pallas_call(
            kernel,
            out_shape=jax.ShapeDtypeStruct((N * NO, 1, TP), jnp.float32),
            grid_spec=pltpu.PrefetchScalarGridSpec(
                num_scalar_prefetch=0,
                grid=(N, NO, NI),
                in_specs=[
                    pl.BlockSpec((None, C, TP),
                                 lambda n, j, i: (n, 0, j * NI + i)),
                    pl.BlockSpec((None, C, TP),
                                 lambda n, j, i: (n, 0, j * NI + i)),
                ],
                out_specs=pl.BlockSpec((None, 1, TP),
                                       lambda n, j, i: (n * NO + j, 0, 0)),
            ),
            compiler_params=pltpu.CompilerParams(
                dimension_semantics=sems, vmem_limit_bytes=vmem_limit),
        )(s3, w3)

    # Both CE terms average over the same N*H*W valid pixels.
    return loss_weight * jnp.sum(partial) / (N * HW)


def _reference(strong_logits, weak_logits, loss_weight=1.0):
    s = strong_logits.astype(jnp.float32)
    w = weak_logits.astype(jnp.float32)

    def ce_mean(logits, labels):
        ls = jax.nn.log_softmax(logits, axis=1)
        picked = jnp.take_along_axis(ls, labels[:, None], axis=1)[:, 0]
        return -jnp.mean(picked)

    t_w = jnp.argmax(w, axis=1)
    t_s = jnp.argmax(s, axis=1)
    return loss_weight * (ce_mean(s, t_w) + ce_mean(w, t_s))


if __name__ == "__main__":
    key = jax.random.PRNGKey(0)
    k1, k2, k3, k4, k5, k6, k7, k8 = jax.random.split(key, 8)

    # 1) Main NCHW case (sublane-dense kernel, HW % 128 == 0).
    N, C, H, W = 2, 4, 16, 16
    strong = jax.random.normal(k1, (N, C, H, W), dtype=jnp.float32)
    weak = jax.random.normal(k2, (N, C, H, W), dtype=jnp.float32)
    loss = jax.block_until_ready(semi_loss_cps(strong, weak, loss_weight=1.0))
    ref = _reference(strong, weak, loss_weight=1.0)
    assert jnp.allclose(loss, ref, rtol=1e-5, atol=1e-5), (loss, ref)

    # 2) Tiny ragged case, HW < 128 (lane kernel + corner-case pad + lane mask).
    strong2 = jax.random.normal(k3, (1, 5, 10, 10), dtype=jnp.float32)
    weak2 = jax.random.normal(k4, (1, 5, 10, 10), dtype=jnp.float32)
    loss2 = jax.block_until_ready(semi_loss_cps(strong2, weak2, loss_weight=0.5))
    ref2 = _reference(strong2, weak2, loss_weight=0.5)
    assert jnp.allclose(loss2, ref2, rtol=1e-5, atol=1e-5), (loss2, ref2)

    # 3) Ragged case with HW >= 128 (lane kernel, NO pad, partial last block).
    strong3 = jax.random.normal(k5, (1, 3, 12, 20), dtype=jnp.float32)
    weak3 = jax.random.normal(k6, (1, 3, 12, 20), dtype=jnp.float32)
    loss3 = jax.block_until_ready(semi_loss_cps(strong3, weak3, loss_weight=1.0))
    ref3 = _reference(strong3, weak3, loss_weight=1.0)
    assert jnp.allclose(loss3, ref3, rtol=1e-5, atol=1e-5), (loss3, ref3)

    # 4) bf16 inputs, more classes (sublane kernel, in-kernel f32 cast).
    strong4 = jax.random.normal(k7, (1, 19, 16, 24), dtype=jnp.bfloat16)
    weak4 = jax.random.normal(k8, (1, 19, 16, 24), dtype=jnp.bfloat16)
    loss4 = jax.block_until_ready(semi_loss_cps(strong4, weak4, loss_weight=1.0))
    ref4 = _reference(strong4, weak4, loss_weight=1.0)
    assert jnp.allclose(loss4, ref4, rtol=1e-4, atol=1e-4), (loss4, ref4)

    print("KERNEL_OK")
</pallas_src>

<mosaic_0001>
module attributes {stable_mosaic.version = 11 : i64} {
  func.func @kernel(%arg0: i32, %arg1: i32, %arg2: i32, %arg3: memref<1x4x2x128xf32, #tpu.memory_space<vmem>>, %arg4: memref<1x4x2x128xf32, #tpu.memory_space<vmem>>, %arg5: memref<1x2x128xf32, #tpu.memory_space<vmem>>) attributes {dimension_semantics = [#tpu.dimension_semantics<parallel>, #tpu.dimension_semantics<parallel>, #tpu.dimension_semantics<arbitrary>], iteration_bounds = array<i64: 2, 1, 1>, scalar_prefetch = 0 : i64, scratch_operands = 0 : i64, tpu.core_type = #tpu.core_type<tc>, window_params = [{transform_indices = @transform_0, window_bounds = array<i64: 1, 4, 2, 128>}, {transform_indices = @transform_1, window_bounds = array<i64: 1, 4, 2, 128>}, {transform_indices = @transform_2, window_bounds = array<i64: 1, 2, 128>}]} {
    %c0_i32 = arith.constant 0 : i32
    %0 = arith.cmpi eq, %arg2, %c0_i32 : i32
    %1 = arith.extui %0 : i1 to i32
    %c0_i32_0 = arith.constant 0 : i32
    %2 = arith.cmpi ne, %1, %c0_i32_0 : i32
    scf.if %2 {
      %cst_68 = arith.constant 0.000000e+00 : f32
      %92 = vector.broadcast %cst_68 : f32 to vector<2x128xf32>
      %c0_69 = arith.constant 0 : index
      %c0_70 = arith.constant 0 : index
      %c0_71 = arith.constant 0 : index
      %93 = vector.load %arg5[%c0_69, %c0_70, %c0_71] : memref<1x2x128xf32, #tpu.memory_space<vmem>>, vector<1x2x128xf32>
      %94 = vector.shape_cast %93 : vector<1x2x128xf32> to vector<2x128xf32>
      %95 = vector.shape_cast %92 : vector<2x128xf32> to vector<1x2x128xf32>
      tpu.vector_store %arg5[%c0_69, %c0_70, %c0_71], %95 {strides = array<i32>} : memref<1x2x128xf32, #tpu.memory_space<vmem>>, vector<1x2x128xf32>,
    } else {
    }
    %c0 = arith.constant 0 : index
    %c0_1 = arith.constant 0 : index
    %c0_2 = arith.constant 0 : index
    %c0_3 = arith.constant 0 : index
    %3 = vector.load %arg3[%c0, %c0_1, %c0_2, %c0_3] : memref<1x4x2x128xf32, #tpu.memory_space<vmem>>, vector<1x1x2x128xf32>
    %4 = vector.shape_cast %3 : vector<1x1x2x128xf32> to vector<2x128xf32>
    %c0_4 = arith.constant 0 : index
    %c0_5 = arith.constant 0 : index
    %c0_6 = arith.constant 0 : index
    %c0_7 = arith.constant 0 : index
    %5 = vector.load %arg4[%c0_4, %c0_5, %c0_6, %c0_7] : memref<1x4x2x128xf32, #tpu.memory_space<vmem>>, vector<1x1x2x128xf32>
    %6 = vector.shape_cast %5 : vector<1x1x2x128xf32> to vector<2x128xf32>
    %c0_8 = arith.constant 0 : index
    %c1 = arith.constant 1 : index
    %c0_9 = arith.constant 0 : index
    %c0_10 = arith.constant 0 : index
    %7 = vector.load %arg3[%c0_8, %c1, %c0_9, %c0_10] : memref<1x4x2x128xf32, #tpu.memory_space<vmem>>, vector<1x1x2x128xf32>
    %8 = vector.shape_cast %7 : vector<1x1x2x128xf32> to vector<2x128xf32>
    %c0_11 = arith.constant 0 : index
    %c1_12 = arith.constant 1 : index
    %c0_13 = arith.constant 0 : index
    %c0_14 = arith.constant 0 : index
    %9 = vector.load %arg4[%c0_11, %c1_12, %c0_13, %c0_14] : memref<1x4x2x128xf32, #tpu.memory_space<vmem>>, vector<1x1x2x128xf32>
    %10 = vector.shape_cast %9 : vector<1x1x2x128xf32> to vector<2x128xf32>
    %11 = arith.cmpf ogt, %10, %6 : vector<2x128xf32>
    %12 = arith.cmpf ogt, %8, %4 : vector<2x128xf32>
    %13 = arith.select %11, %8, %4 : vector<2x128xi1>, vector<2x128xf32>
    %14 = arith.select %12, %10, %6 : vector<2x128xi1>, vector<2x128xf32>
    %15 = arith.select %11, %10, %6 : vector<2x128xi1>, vector<2x128xf32>
    %16 = arith.select %12, %8, %4 : vector<2x128xi1>, vector<2x128xf32>
    %c0_15 = arith.constant 0 : index
    %c2 = arith.constant 2 : index
    %c0_16 = arith.constant 0 : index
    %c0_17 = arith.constant 0 : index
    %17 = vector.load %arg3[%c0_15, %c2, %c0_16, %c0_17] : memref<1x4x2x128xf32, #tpu.memory_space<vmem>>, vector<1x1x2x128xf32>
    %18 = vector.shape_cast %17 : vector<1x1x2x128xf32> to vector<2x128xf32>
    %c0_18 = arith.constant 0 : index
    %c2_19 = arith.constant 2 : index
    %c0_20 = arith.constant 0 : index
    %c0_21 = arith.constant 0 : index
    %19 = vector.load %arg4[%c0_18, %c2_19, %c0_20, %c0_21] : memref<1x4x2x128xf32, #tpu.memory_space<vmem>>, vector<1x1x2x128xf32>
    %20 = vector.shape_cast %19 : vector<1x1x2x128xf32> to vector<2x128xf32>
    %21 = arith.cmpf ogt, %20, %15 : vector<2x128xf32>
    %22 = arith.cmpf ogt, %18, %16 : vector<2x128xf32>
    %23 = arith.select %21, %18, %13 : vector<2x128xi1>, vector<2x128xf32>
    %24 = arith.select %22, %20, %14 : vector<2x128xi1>, vector<2x128xf32>
    %25 = arith.select %21, %20, %15 : vector<2x128xi1>, vector<2x128xf32>
    %26 = arith.select %22, %18, %16 : vector<2x128xi1>, vector<2x128xf32>
    %c0_22 = arith.constant 0 : index
    %c3 = arith.constant 3 : index
    %c0_23 = arith.constant 0 : index
    %c0_24 = arith.constant 0 : index
    %27 = vector.load %arg3[%c0_22, %c3, %c0_23, %c0_24] : memref<1x4x2x128xf32, #tpu.memory_space<vmem>>, vector<1x1x2x128xf32>
    %28 = vector.shape_cast %27 : vector<1x1x2x128xf32> to vector<2x128xf32>
    %c0_25 = arith.constant 0 : index
    %c3_26 = arith.constant 3 : index
    %c0_27 = arith.constant 0 : index
    %c0_28 = arith.constant 0 : index
    %29 = vector.load %arg4[%c0_25, %c3_26, %c0_27, %c0_28] : memref<1x4x2x128xf32, #tpu.memory_space<vmem>>, vector<1x1x2x128xf32>
    %30 = vector.shape_cast %29 : vector<1x1x2x128xf32> to vector<2x128xf32>
    %31 = arith.cmpf ogt, %30, %25 : vector<2x128xf32>
    %32 = arith.cmpf ogt, %28, %26 : vector<2x128xf32>
    %33 = arith.select %31, %28, %23 : vector<2x128xi1>, vector<2x128xf32>
    %34 = arith.select %32, %30, %24 : vector<2x128xi1>, vector<2x128xf32>
    %35 = arith.select %31, %30, %25 : vector<2x128xi1>, vector<2x128xf32>
    %36 = arith.select %32, %28, %26 : vector<2x128xi1>, vector<2x128xf32>
    %cst = arith.constant 0.000000e+00 : f32
    %37 = vector.broadcast %cst : f32 to vector<2x128xf32>
    %cst_29 = arith.constant 0.000000e+00 : f32
    %38 = vector.broadcast %cst_29 : f32 to vector<2x128xf32>
    %c0_30 = arith.constant 0 : index
    %c0_31 = arith.constant 0 : index
    %c0_32 = arith.constant 0 : index
    %c0_33 = arith.constant 0 : index
    %39 = vector.load %arg3[%c0_30, %c0_31, %c0_32, %c0_33] : memref<1x4x2x128xf32, #tpu.memory_space<vmem>>, vector<1x1x2x128xf32>
    %40 = vector.shape_cast %39 : vector<1x1x2x128xf32> to vector<2x128xf32>
    %41 = arith.subf %40, %36 : vector<2x128xf32>
    %42 = math.exp %41 : vector<2x128xf32>
    %43 = arith.addf %37, %42 : vector<2x128xf32>
    %c0_34 = arith.constant 0 : index
    %c0_35 = arith.constant 0 : index
    %c0_36 = arith.constant 0 : index
    %c0_37 = arith.constant 0 : index
    %44 = vector.load %arg4[%c0_34, %c0_35, %c0_36, %c0_37] : memref<1x4x2x128xf32, #tpu.memory_space<vmem>>, vector<1x1x2x128xf32>
    %45 = vector.shape_cast %44 : vector<1x1x2x128xf32> to vector<2x128xf32>
    %46 = arith.subf %45, %35 : vector<2x128xf32>
    %47 = math.exp %46 : vector<2x128xf32>
    %48 = arith.addf %38, %47 : vector<2x128xf32>
    %c0_38 = arith.constant 0 : index
    %c1_39 = arith.constant 1 : index
    %c0_40 = arith.constant 0 : index
    %c0_41 = arith.constant 0 : index
    %49 = vector.load %arg3[%c0_38, %c1_39, %c0_40, %c0_41] : memref<1x4x2x128xf32, #tpu.memory_space<vmem>>, vector<1x1x2x128xf32>
    %50 = vector.shape_cast %49 : vector<1x1x2x128xf32> to vector<2x128xf32>
    %51 = arith.subf %50, %36 : vector<2x128xf32>
    %52 = math.exp %51 : vector<2x128xf32>
    %53 = arith.addf %43, %52 : vector<2x128xf32>
    %c0_42 = arith.constant 0 : index
    %c1_43 = arith.constant 1 : index
    %c0_44 = arith.constant 0 : index
    %c0_45 = arith.constant 0 : index
    %54 = vector.load %arg4[%c0_42, %c1_43, %c0_44, %c0_45] : memref<1x4x2x128xf32, #tpu.memory_space<vmem>>, vector<1x1x2x128xf32>
    %55 = vector.shape_cast %54 : vector<1x1x2x128xf32> to vector<2x128xf32>
    %56 = arith.subf %55, %35 : vector<2x128xf32>
    %57 = math.exp %56 : vector<2x128xf32>
    %58 = arith.addf %48, %57 : vector<2x128xf32>
    %c0_46 = arith.constant 0 : index
    %c2_47 = arith.constant 2 : index
    %c0_48 = arith.constant 0 : index
    %c0_49 = arith.constant 0 : index
    %59 = vector.load %arg3[%c0_46, %c2_47, %c0_48, %c0_49] : memref<1x4x2x128xf32, #tpu.memory_space<vmem>>, vector<1x1x2x128xf32>
    %60 = vector.shape_cast %59 : vector<1x1x2x128xf32> to vector<2x128xf32>
    %61 = arith.subf %60, %36 : vector<2x128xf32>
    %62 = math.exp %61 : vector<2x128xf32>
    %63 = arith.addf %53, %62 : vector<2x128xf32>
    %c0_50 = arith.constant 0 : index
    %c2_51 = arith.constant 2 : index
    %c0_52 = arith.constant 0 : index
    %c0_53 = arith.constant 0 : index
    %64 = vector.load %arg4[%c0_50, %c2_51, %c0_52, %c0_53] : memref<1x4x2x128xf32, #tpu.memory_space<vmem>>, vector<1x1x2x128xf32>
    %65 = vector.shape_cast %64 : vector<1x1x2x128xf32> to vector<2x128xf32>
    %66 = arith.subf %65, %35 : vector<2x128xf32>
    %67 = math.exp %66 : vector<2x128xf32>
    %68 = arith.addf %58, %67 : vector<2x128xf32>
    %c0_54 = arith.constant 0 : index
    %c3_55 = arith.constant 3 : index
    %c0_56 = arith.constant 0 : index
    %c0_57 = arith.constant 0 : index
    %69 = vector.load %arg3[%c0_54, %c3_55, %c0_56, %c0_57] : memref<1x4x2x128xf32, #tpu.memory_space<vmem>>, vector<1x1x2x128xf32>
    %70 = vector.shape_cast %69 : vector<1x1x2x128xf32> to vector<2x128xf32>
    %71 = arith.subf %70, %36 : vector<2x128xf32>
    %72 = math.exp %71 : vector<2x128xf32>
    %73 = arith.addf %63, %72 : vector<2x128xf32>
    %c0_58 = arith.constant 0 : index
    %c3_59 = arith.constant 3 : index
    %c0_60 = arith.constant 0 : index
    %c0_61 = arith.constant 0 : index
    %74 = vector.load %arg4[%c0_58, %c3_59, %c0_60, %c0_61] : memref<1x4x2x128xf32, #tpu.memory_space<vmem>>, vector<1x1x2x128xf32>
    %75 = vector.shape_cast %74 : vector<1x1x2x128xf32> to vector<2x128xf32>
    %76 = arith.subf %75, %35 : vector<2x128xf32>
    %77 = math.exp %76 : vector<2x128xf32>
    %78 = arith.addf %68, %77 : vector<2x128xf32>
    %79 = math.log %73 : vector<2x128xf32>
    %80 = arith.addf %36, %79 : vector<2x128xf32>
    %81 = arith.subf %80, %33 : vector<2x128xf32>
    %82 = math.log %78 : vector<2x128xf32>
    %83 = arith.addf %35, %82 : vector<2x128xf32>
    %84 = arith.subf %83, %34 : vector<2x128xf32>
    %85 = arith.addf %81, %84 : vector<2x128xf32>
    %c0_62 = arith.constant 0 : index
    %c0_63 = arith.constant 0 : index
    %c0_64 = arith.constant 0 : index
    %86 = vector.load %arg5[%c0_62, %c0_63, %c0_64] : memref<1x2x128xf32, #tpu.memory_space<vmem>>, vector<1x2x128xf32>
    %87 = vector.shape_cast %86 : vector<1x2x128xf32> to vector<2x128xf32>
    %88 = arith.addf %87, %85 : vector<2x128xf32>
    %c0_65 = arith.constant 0 : index
    %c0_66 = arith.constant 0 : index
    %c0_67 = arith.constant 0 : index
    %89 = vector.load %arg5[%c0_65, %c0_66, %c0_67] : memref<1x2x128xf32, #tpu.memory_space<vmem>>, vector<1x2x128xf32>
    %90 = vector.shape_cast %89 : vector<1x2x128xf32> to vector<2x128xf32>
    %91 = vector.shape_cast %88 : vector<2x128xf32> to vector<1x2x128xf32>
    tpu.vector_store %arg5[%c0_65, %c0_66, %c0_67], %91 {strides = array<i32>} : memref<1x2x128xf32, #tpu.memory_space<vmem>>, vector<1x2x128xf32>,
    return
  }
  func.func @transform_0(%arg0: i32, %arg1: i32, %arg2: i32) -> (i32, i32, i32, i32) {
    %c1_i32 = arith.constant 1 : i32
    %0 = arith.muli %arg1, %c1_i32 : i32
    %1 = arith.addi %0, %arg2 : i32
    %c0_i32 = arith.constant 0 : i32
    %c0_i32_0 = arith.constant 0 : i32
    %c0_i32_1 = arith.constant 0 : i32
    return %arg0, %c0_i32, %1, %c0_i32_0 : i32, i32, i32, i32
  }
  func.func @transform_1(%arg0: i32, %arg1: i32, %arg2: i32) -> (i32, i32, i32, i32) {
    %c1_i32 = arith.constant 1 : i32
    %0 = arith.muli %arg1, %c1_i32 : i32
    %1 = arith.addi %0, %arg2 : i32
    %c0_i32 = arith.constant 0 : i32
    %c0_i32_0 = arith.constant 0 : i32
    %c0_i32_1 = arith.constant 0 : i32
    return %arg0, %c0_i32, %1, %c0_i32_0 : i32, i32, i32, i32
  }
  func.func @transform_2(%arg0: i32, %arg1: i32, %arg2: i32) -> (i32, i32, i32) {
    %c1_i32 = arith.constant 1 : i32
    %0 = arith.muli %arg0, %c1_i32 : i32
    %1 = arith.addi %0, %arg1 : i32
    %c0_i32 = arith.constant 0 : i32
    %c0_i32_0 = arith.constant 0 : i32
    %c0_i32_1 = arith.constant 0 : i32
    return %1, %c0_i32, %c0_i32_0 : i32, i32, i32
  }
}

</mosaic_0001>

<bundles_post_ra>
// kernel: semi_loss_cps.1
= control target key start
LH: loop header
LB: loop body
LE: loop exit
PB: predicated region body
PF: predicated region fallthrough
CT: control target
= control target key end

     0   :  { %s500_s9 = smov 0   ;;  %s502_s10 = smov 0   ;;  %s585_s0 = inlined_call_operand.vmem [shape: f32[2,4,2,128], index: 0, kind: input, shape index: {}]   ;;  %s586_s1 = inlined_call_operand.vmem [shape: f32[2,4,2,128], index: 1, kind: input, shape index: {}]   ;;  %s587_s2 = inlined_call_operand.vmem [shape: f32[2,2,128], index: 2, kind: output, shape index: {}]  }
   0x1   :  { %s504_s11 = smov 0  }
   0x2 LB: > { %s31_s12 = sadd.s32 1, %s478_s10  ;;  %p399_p0 = scmp.ge.s32.totalorder %s482_s11, 1  ;;  %s482_s11 = sphi %s504_s11, %s12_s11   ;;  %s478_s10 = sphi %s502_s10, %s589_s10   ;;  %s474_s9 = sphi %s500_s9, %s588_s9  }
   0x3   : > { %p33_p1 = scmp.ge.s32.totalorder %s31_s12, 2  ;;  %p161_p2 = scmp.lt.s32.totalorder %s482_s11, 3 }
   0x5   : > { %s591_s12 = smov (%p33_p1, %s31_s12), 0  ;;  %p162_p3 = pnand %p399_p0, %p161_p2 }
   0x6   : > { %p197_p4 = scmp.lt.s32.totalorder (!%p162_p3), %s474_s9, 1  ;;  %v484_v3 = vmov (!%p162_p3), 0.0  }
   0x7   : > { %165 = sbr.rel (%p162_p3) target bundleno = 70 (0x46), region = 28 }
   0xe   : > { %s593_s9 = smov (!%p197_p4, %s474_s9), 1 }
   0xf   : > { %s413_s13 = sshll.u32 %s593_s9, 3  ;;  %s404_s14 = sshll.u32 %s593_s9, 1 }
  0x10   : > { %s204_s17 = scalar_lea.vmem %s585_s0, %s413_s13  ;;  %s214_s20 = scalar_lea.vmem %s586_s1, %s413_s13 }
  0x11   : > { %s527_s23 = scalar_lea.vmem %s587_s2, %s404_s14  ;;  %v529_v0 = vld [vmem:[%s204_s17] sm:$0x3]  ;;  %v533_v2 = vld [vmem:[%s204_s17 + $0x2] sm:$0x3]  ;;  %v407_v5 = vld [vmem:[%s204_s17 + $0x4] sm:$0x3] }
  0x12   : > { %v531_v1 = vld [vmem:[%s214_s20] sm:$0x3]  ;;  %226 = vst [vmem:[%s527_s23] sm:$0x3] %v484_v3  ;;  %v406_v4 = vld [vmem:[%s214_s20 + $0x2] sm:$0x3]  ;;  %vm234_vm0 = vcmp.gt.f32.partialorder %v533_v2, %v529_v0 }
  0x13   : > { %v408_v6 = vld [vmem:[%s214_s20 + $0x4] sm:$0x3]  ;;  %vm233_vm1 = vcmp.gt.f32.partialorder %v406_v4, %v531_v1  ;;  %v539_v7 = vld [vmem:[%s204_s17 + $0x6] sm:$0x3]  ;;  %v238_v8 = vsel %vm234_vm0, %v533_v2, %v529_v0  ;;  %v236_v46 = vsel %vm234_vm0, %v406_v4, %v531_v1 }
  0x14   : > { %v410_v9 = vld [vmem:[%s214_s20 + $0x6] sm:$0x3]  ;;  %v237_v10 = vsel %vm233_vm1, %v406_v4, %v531_v1  ;;  %vm244_vm2 = vcmp.gt.f32.partialorder %v407_v5, %v238_v8  ;;  %v235_v45 = vsel %vm233_vm1, %v533_v2, %v529_v0 }
  0x15   : > { %vm243_vm3 = vcmp.gt.f32.partialorder %v408_v6, %v237_v10  ;;  %v248_v11 = vsel %vm244_vm2, %v407_v5, %v238_v8  ;;  %v246_v49 = vsel %vm244_vm2, %v408_v6, %v236_v46 }
  0x16   : > { %v247_v12 = vsel %vm243_vm3, %v408_v6, %v237_v10  ;;  %vm254_vm4 = vcmp.gt.f32.partialorder %v539_v7, %v248_v11  ;;  %v245_v47 = vsel %vm243_vm3, %v407_v5, %v235_v45 }
  0x17   : > { %vm253_vm5 = vcmp.gt.f32.partialorder %v410_v9, %v247_v12  ;;  %v258_v13 = vsel %vm254_vm4, %v539_v7, %v248_v11  ;;  %v256_v54 = vsel %vm254_vm4, %v410_v9, %v246_v49 }
  0x18   : > { %v257_v14 = vsel %vm253_vm5, %v410_v9, %v247_v12  ;;  %v259_v15 = vsub.f32 %v529_v0, %v258_v13  ;;  %v267_v16 = vsub.f32 %v533_v2, %v258_v13  ;;  %v275_v19 = vsub.f32 %v407_v5, %v258_v13 }
  0x19   : > { %v263_v17 = vsub.f32 %v531_v1, %v257_v14  ;;  %v271_v18 = vsub.f32 %v406_v4, %v257_v14  ;;  %v279_v20 = vsub.f32 %v408_v6, %v257_v14  ;;  %v283_v23 = vsub.f32 %v539_v7, %v258_v13  ;;  %v300_v59 = vld [vmem:[%s527_s23] sm:$0x3] }
  0x1a   : > { %v260_v21 = vmul.f32 1.442695, %v259_v15  ;;  %v268_v22 = vmul.f32 1.442695, %v267_v16  ;;  %v287_v26 = vsub.f32 %v410_v9, %v257_v14  ;;  %v276_v27 = vmul.f32 1.442695, %v275_v19 }
  0x1b   : > { %v264_v24 = vmul.f32 1.442695, %v263_v17  ;;  %v272_v25 = vmul.f32 1.442695, %v271_v18  ;;  %v280_v28 = vmul.f32 1.442695, %v279_v20  ;;  %v255_v52 = vsel %vm253_vm5, %v539_v7, %v245_v47 }
  0x1c   : > { %440 = vpow2.f32 %v260_v21  ;;  %v284_v29 = vmul.f32 1.442695, %v283_v23  ;;  %v288_v30 = vmul.f32 1.442695, %v287_v26 }
  0x1d   : > { %442 = vpow2.f32 %v264_v24 }
  0x1e   : > { %444 = vpow2.f32 %v268_v22 }
  0x1f   : > { %446 = vpow2.f32 %v272_v25 }
  0x20   : > { %448 = vpow2.f32 %v276_v27 }
  0x21   : > { %450 = vpow2.f32 %v280_v28 }
  0x22   : > { %452 = vpow2.f32 %v284_v29 }
  0x23   : > { %454 = vpow2.f32 %v288_v30 }
  0x26   : > { %v441_v31 = vpop.eup %440 }
  0x27   : > { %v443_v32 = vpop.eup %442 }
  0x28   : > { %v445_v33 = vpop.eup %444 }
  0x29   : > { %v447_v34 = vpop.eup %446  ;;  %v270_v35 = vadd.f32 %v445_v33, %v441_v31 }
  0x2a   : > { %v449_v36 = vpop.eup %448  ;;  %v274_v37 = vadd.f32 %v447_v34, %v443_v32 }
  0x2b   : > { %v451_v38 = vpop.eup %450  ;;  %v278_v39 = vadd.f32 %v449_v36, %v270_v35 }
  0x2c   : > { %v453_v40 = vpop.eup %452  ;;  %v282_v41 = vadd.f32 %v451_v38, %v274_v37 }
  0x2d   : > { %v455_v42 = vpop.eup %454  ;;  %v286_v43 = vadd.f32 %v453_v40, %v278_v39 }
  0x2e   : > { %v290_v44 = vadd.f32 %v455_v42, %v282_v41 }
  0x2f   : > { %456 = vlog2.f32 %v286_v43 }
  0x30   : > { %458 = vlog2.f32 %v290_v44 }
  0x39   : > { %v457_v48 = vpop.eup %456 }
  0x3a   : > { %v459_v50 = vpop.eup %458  ;;  %v292_v51 = vmul.f32 0.6931472, %v457_v48 }
  0x3b   : > { %v296_v53 = vmul.f32 0.6931472, %v459_v50 }
  0x3c   : > { %v293_v55 = vadd.f32 %v292_v51, %v258_v13 }
  0x3d   : > { %v297_v56 = vadd.f32 %v296_v53, %v257_v14 }
  0x3e   : > { %v294_v57 = vsub.f32 %v293_v55, %v255_v52 }
  0x3f   : > { %v298_v58 = vsub.f32 %v297_v56, %v256_v54 }
  0x41   : > { %v299_v60 = vadd.f32 %v298_v58, %v294_v57 }
  0x43   : > { %v301_v61 = vadd.f32 %v300_v59, %v299_v60 }
  0x45   : > { %302 = vst [vmem:[%s527_s23] sm:$0x3] %v301_v61 }
  0x46 PF: > { %s12_s11 = sadd.s32 1, %s482_s11   ;;  %s588_s9 = smov %s478_s10 }
  0x47   : > { %p9_p5 = scmp.ge.s32.totalorder %s12_s11, 4   ;;  %s589_s10 = smov %s591_s12 }
  0x49   :  { %11 = sbr.rel (!%p9_p5) target bundleno = 2 (0x2), region = 71 }

</bundles_post_ra>
